<compile_context>
chip_gen: v7x
topology: tpu7x:2x2x1
jax: 0.10.0
libtpu: 0.0.40
codegen_flags: <defaults>
</compile_context>

<pallas_src>
import numpy as np
import jax
import jax.numpy as jnp
from jax.experimental import pallas as pl
from jax.experimental.pallas import tpu as pltpu

# ---------------- cfg defaults (py-faster-rcnn TRAIN.*) ----------------
RPN_NEGATIVE_OVERLAP = 0.3
RPN_POSITIVE_OVERLAP = 0.7
RPN_BBOX_INSIDE_WEIGHT = 1.0      # RPN_BBOX_INSIDE_WEIGHTS[0]
# RPN_POSITIVE_WEIGHT = -1.0  -> uniform 1/num_examples weighting path.
# TODO(synk): random fg/bg subsampling (RPN_BATCHSIZE=256, RPN_FG_FRACTION=0.5,
# np.random.permutation) is RNG-driven with dynamic shapes and is omitted.


# ---------------- generate_anchors (deterministic, numpy) ----------------
def _whctrs(anchor):
    w = anchor[2] - anchor[0] + 1
    h = anchor[3] - anchor[1] + 1
    x_ctr = anchor[0] + 0.5 * (w - 1)
    y_ctr = anchor[1] + 0.5 * (h - 1)
    return w, h, x_ctr, y_ctr


def _mkanchors(ws, hs, x_ctr, y_ctr):
    ws = ws[:, np.newaxis]
    hs = hs[:, np.newaxis]
    return np.hstack((x_ctr - 0.5 * (ws - 1), y_ctr - 0.5 * (hs - 1),
                      x_ctr + 0.5 * (ws - 1), y_ctr + 0.5 * (hs - 1)))


def _ratio_enum(anchor, ratios):
    w, h, x_ctr, y_ctr = _whctrs(anchor)
    size = w * h
    size_ratios = size / ratios
    ws = np.round(np.sqrt(size_ratios))
    hs = np.round(ws * ratios)
    return _mkanchors(ws, hs, x_ctr, y_ctr)


def _scale_enum(anchor, scales):
    w, h, x_ctr, y_ctr = _whctrs(anchor)
    ws = w * scales
    hs = h * scales
    return _mkanchors(ws, hs, x_ctr, y_ctr)


def generate_anchors(base_size=16, ratios=(0.5, 1, 2), scales=2 ** np.arange(3, 6)):
    base_anchor = np.array([1, 1, base_size, base_size], dtype=np.float64) - 1
    ratio_anchors = _ratio_enum(base_anchor, np.array(ratios, dtype=np.float64))
    return np.vstack([_scale_enum(ratio_anchors[i, :], np.array(scales, dtype=np.float64))
                      for i in range(ratio_anchors.shape[0])])


# ---------------- shared per-tile IoU (bbox_overlaps_batch) ----------------
def _tile_common(iou_ref, gt, imh, imw):
    """IoU of one anchor tile against the G gt boxes.

    iou_ref rows: [x1, y1, x2, y2, area, static_inside]  (6, TN)
    gt cols     : [x1, y1, x2, y2, area, is_zero_box, 0, 0]  (G, 8)
    imh/imw     : f32 scalars (broadcast for free from sregs).
    """
    ax1 = iou_ref[0:1, :]
    ay1 = iou_ref[1:2, :]
    ax2 = iou_ref[2:3, :]
    ay2 = iou_ref[3:4, :]
    a_area = iou_ref[4:5, :]
    static_in = iou_ref[5:6, :]

    # inside-image mask: static part (x1 >= 0, y1 >= 0, not padding lane) is
    # baked into the slab; only the im_info-dependent part is applied here.
    inside = jnp.logical_and(jnp.logical_and(static_in > 0.5, ax2 < imw),
                             ay2 < imh)                      # (1, TN) bool

    gx1 = gt[:, 0:1]
    gy1 = gt[:, 1:2]
    gx2 = gt[:, 2:3]
    gy2 = gt[:, 3:4]
    g_area = gt[:, 4:5]
    gt_zero = gt[:, 5:6] > 0.5                               # (G, 1) bool

    iw = jnp.maximum(jnp.minimum(ax2, gx2) - jnp.maximum(ax1, gx1) + 1.0, 0.0)
    ih = jnp.maximum(jnp.minimum(ay2, gy2) - jnp.maximum(ay1, gy1) + 1.0, 0.0)
    inter = iw * ih                                          # (G, TN)
    ov = inter / (a_area + g_area - inter)
    ov = jnp.where(gt_zero, 0.0, ov)   # zero-padded gt boxes -> overlap 0
    # NOTE: generated anchors are never degenerate 1x1, so the reference's
    # anchors_area_zero -> -1 fill is dropped.
    return ov, inside


# ---------------- pass 1: per-(tile, batch, gt) max overlap -----------------
def _stats_kernel(imhw_ref, iou_ref, gtc_ref, gmax_ref):
    imh = imhw_ref[0].astype(jnp.float32)
    imw = imhw_ref[1].astype(jnp.float32)
    gt = gtc_ref[0]                                          # (G, 8)
    ov, inside = _tile_common(iou_ref, gt, imh, imw)
    ov_in = jnp.where(inside, ov, -1e30)                     # gt-max over inside only
    gmax_ref[0, 0] = jnp.max(ov_in, axis=1, keepdims=True)   # (G, 1)


# ---------------- pass 2: labels / bbox targets / weights -------------------
def _main_kernel(imhw_ref, iou_ref, xf_ref, gtc_ref, gtr_ref, gmax_ref, out_ref):
    imh = imhw_ref[0].astype(jnp.float32)
    imw = imhw_ref[1].astype(jnp.float32)

    gt = gtc_ref[0]                                          # (G, 8)
    G = gt.shape[0]
    ov, inside = _tile_common(iou_ref, gt, imh, imw)

    gmax = gmax_ref[0]                                       # (G, 1), 0 -> 1e-5 done outside
    keep = jnp.sum((ov == gmax).astype(jnp.float32), axis=0, keepdims=True)

    max_ov = jnp.max(ov, axis=0, keepdims=True)              # (1, TN)
    g_iota = jax.lax.broadcasted_iota(jnp.int32, ov.shape, 0)
    argmax = jnp.min(jnp.where(ov == max_ov, g_iota, G), axis=0, keepdims=True)
    onehot = (g_iota == argmax).astype(jnp.float32)          # (G, TN)

    # assigned-gt params per anchor: [gt_ctr_x, gt_ctr_y, log gw, log gh, 0..]
    # as one (8, G) @ (G, TN) one-hot MXU matmul.  Precision pinned to f32:
    # gt centres are ~1e3 and bf16 passes would perturb targets at pixel scale.
    assigned = jnp.dot(gtr_ref[0], onehot,
                       preferred_element_type=jnp.float32,
                       precision=jax.lax.Precision.HIGHEST)  # (8, TN)

    # ---- labels (RPN_CLOBBER_POSITIVES = False path) ----
    labels = jnp.full(max_ov.shape, -1.0, dtype=jnp.float32)
    labels = jnp.where(max_ov < RPN_NEGATIVE_OVERLAP, 0.0, labels)
    labels = jnp.where(keep > 0.0, 1.0, labels)
    labels = jnp.where(max_ov >= RPN_POSITIVE_OVERLAP, 1.0, labels)
    labels = jnp.where(inside, labels, -1.0)                 # _unmap(fill=-1)

    inw = jnp.where(labels == 1.0, RPN_BBOX_INSIDE_WEIGHT, 0.0)
    # unnormalised outside weight (1.0 where label >= 0); 1/num_examples is
    # applied in XLA outside the kernel.
    outw = jnp.where(jnp.logical_or(labels == 1.0, labels == 0.0), 1.0, 0.0)

    # ---- stacked bbox_transform_batch: (gt_param - anchor_param) * scale ----
    # xf rows 0:4 = [ex_ctr_x, ex_ctr_y, log aw, log ah], rows 4:8 = [1/aw, 1/ah, 1, 1]
    targets = jnp.where(inside,
                        (assigned[0:4, :] - xf_ref[0:4, :]) * xf_ref[4:8, :],
                        0.0)                                 # (4, TN) [dx, dy, dw, dh]

    out_ref[0, 0:1, :] = labels
    out_ref[0, 1:2, :] = inw
    out_ref[0, 2:3, :] = outw
    out_ref[0, 3:7, :] = targets                             # single (4, TN) store


# ---------------- wrapper ----------------
def anchor_target_layer(rpn_cls_score, gt_boxes, im_info, num_boxes,
                        feat_stride=16, scales=(8, 16, 32), ratios=(0.5, 1, 2),
                        tile_n=8192):
    del num_boxes  # not used by the reference forward
    B, G = gt_boxes.shape[0], gt_boxes.shape[1]
    H, W = rpn_cls_score.shape[2], rpn_cls_score.shape[3]
    assert tile_n % 128 == 0

    # ---- numpy-precomputed constant anchor slabs ----
    anchors = generate_anchors(scales=np.array(scales), ratios=np.array(ratios))
    A = anchors.shape[0]
    shift_x = np.arange(0, W) * feat_stride
    shift_y = np.arange(0, H) * feat_stride
    sx, sy = np.meshgrid(shift_x, shift_y)
    shifts = np.vstack((sx.ravel(), sy.ravel(), sx.ravel(), sy.ravel())).transpose()
    K = shifts.shape[0]
    # anchor-major (a, h, w) enumeration -> final layouts need no big transpose
    all_anchors = (anchors.reshape(A, 1, 4) +
                   shifts.reshape(1, K, 4)).reshape(A * K, 4).astype(np.float32)
    N = A * K

    # Tile size: as large as possible (amortise grid-step overhead, bigger
    # DMAs) while keeping the per-tile working set (~(G,TN) temporaries +
    # double-buffered slabs/output) under ~12 MiB (v5e scoped default 16 MiB,
    # v7x 32 of 64 MiB).
    bytes_per_lane = 4 * (8 * max(G, 8) + 56)
    vmem_cap_tn = max(128, (12 * 1024 * 1024 // bytes_per_lane) // 128 * 128)
    n_round = max(128, -(-N // 128) * 128)
    TN = min(int(tile_n), vmem_cap_tn, n_round)
    T = -(-N // TN)
    Npad = T * TN

    x1, y1, x2, y2 = (all_anchors[:, i] for i in range(4))
    aw = x2 - x1 + 1.0
    ah = y2 - y1 + 1.0

    # IoU slab: rows [x1, y1, x2, y2, area, static_inside]
    iou_slab = np.zeros((6, Npad), dtype=np.float32)
    iou_slab[0, :N] = x1
    iou_slab[1, :N] = y1
    iou_slab[2, :N] = x2
    iou_slab[3, :N] = y2
    iou_slab[4, :N] = aw * ah
    iou_slab[5, :N] = ((x1 >= 0.0) & (y1 >= 0.0)).astype(np.float32)
    iou_slab[4, N:] = 1.0                     # padding lanes: unit area, never inside

    # transform slab: rows [ex_ctr_x, ex_ctr_y, log aw, log ah, 1/aw, 1/ah, 1, 1]
    xform_slab = np.zeros((8, Npad), dtype=np.float32)
    xform_slab[0, :N] = x1 + 0.5 * aw
    xform_slab[1, :N] = y1 + 0.5 * ah
    xform_slab[2, :N] = np.log(aw)
    xform_slab[3, :N] = np.log(ah)
    xform_slab[4, :N] = 1.0 / aw
    xform_slab[5, :N] = 1.0 / ah
    xform_slab[4, N:] = 1.0                   # padding lanes: finite scales
    xform_slab[5, N:] = 1.0
    xform_slab[6, :] = 1.0
    xform_slab[7, :] = 1.0

    iou_slab = jnp.asarray(iou_slab)
    xform_slab = jnp.asarray(xform_slab)

    # ---- tiny per-gt derived tables (per batch) ----
    gtf = gt_boxes.astype(jnp.float32)
    gx1, gy1, gx2, gy2 = gtf[..., 0], gtf[..., 1], gtf[..., 2], gtf[..., 3]
    gw = gx2 - gx1 + 1.0
    gh = gy2 - gy1 + 1.0
    zeros_bg = jnp.zeros_like(gx1)
    gt_cols = jnp.stack(
        [gx1, gy1, gx2, gy2, gw * gh,
         jnp.logical_and(gw == 1.0, gh == 1.0).astype(jnp.float32),
         zeros_bg, zeros_bg], axis=-1)                               # (B, G, 8)
    gt_rows = jnp.stack(
        [gx1 + 0.5 * gw, gy1 + 0.5 * gh, jnp.log(gw), jnp.log(gh),
         zeros_bg, zeros_bg, zeros_bg, zeros_bg], axis=1)            # (B, 8, G)

    # reference uses long(im_info[0][...]) for every batch -> int truncation
    im_hw = im_info[0, :2].astype(jnp.int32)                         # [h, w] in SMEM

    # ---- pass 1: per-(tile, batch, gt) max overlap ----
    gmax_tiles = pl.pallas_call(
        _stats_kernel,
        out_shape=jax.ShapeDtypeStruct((T, B, G, 1), jnp.float32),
        grid_spec=pltpu.PrefetchScalarGridSpec(
            num_scalar_prefetch=1,
            grid=(T, B),
            in_specs=[
                pl.BlockSpec((6, TN), lambda t, b, s: (0, t)),
                pl.BlockSpec((1, G, 8), lambda t, b, s: (b, 0, 0)),
            ],
            out_specs=pl.BlockSpec((1, 1, G, 1), lambda t, b, s: (t, b, 0, 0)),
        ),
        compiler_params=pltpu.CompilerParams(
            dimension_semantics=("parallel", "parallel")),
    )(im_hw, iou_slab, gt_cols)

    gmax = jnp.max(gmax_tiles, axis=0)                       # (B, G, 1)
    gmax = jnp.where(gmax == 0.0, jnp.float32(1e-5), gmax)   # gt_max == 0 -> 1e-5

    # ---- pass 2: labels / targets / weights ----
    out_slab = pl.pallas_call(
        _main_kernel,
        out_shape=jax.ShapeDtypeStruct((B, 7, Npad), jnp.float32),
        grid_spec=pltpu.PrefetchScalarGridSpec(
            num_scalar_prefetch=1,
            grid=(T, B),
            in_specs=[
                pl.BlockSpec((6, TN), lambda t, b, s: (0, t)),
                pl.BlockSpec((8, TN), lambda t, b, s: (0, t)),
                pl.BlockSpec((1, G, 8), lambda t, b, s: (b, 0, 0)),
                pl.BlockSpec((1, 8, G), lambda t, b, s: (b, 0, 0)),
                pl.BlockSpec((1, G, 1), lambda t, b, s: (b, 0, 0)),
            ],
            out_specs=pl.BlockSpec((1, 7, TN), lambda t, b, s: (b, 0, t)),
        ),
        compiler_params=pltpu.CompilerParams(
            dimension_semantics=("parallel", "parallel")),
    )(im_hw, iou_slab, xform_slab, gt_cols, gt_rows, gmax)

    labels = out_slab[:, 0, :N]              # (B, N) in (a, h, w) order
    inw = out_slab[:, 1, :N]
    outw_mask = out_slab[:, 2, :N]
    tgt = out_slab[:, 3:7, :N]               # (B, 4, N) coord-major

    # uniform pos/neg weight = 1 / num_examples(LAST batch, labels >= 0);
    # same divide-by-zero hazard as the reference if that batch has none.
    num_examples = jnp.sum(outw_mask[B - 1])
    outw = outw_mask * (1.0 / num_examples)

    # final PyTorch layouts (anchor-major ordering -> no spatial transposes)
    labels_out = labels.reshape(B, 1, A * H, W)
    bbox_targets_out = tgt.reshape(B, 4, A, H, W).transpose(
        0, 2, 1, 3, 4).reshape(B, 4 * A, H, W)
    inw_out = jnp.broadcast_to(inw.reshape(B, A, 1, H, W),
                               (B, A, 4, H, W)).reshape(B, 4 * A, H, W)
    outw_out = jnp.broadcast_to(outw.reshape(B, A, 1, H, W),
                                (B, A, 4, H, W)).reshape(B, 4 * A, H, W)
    return [labels_out, bbox_targets_out, inw_out, outw_out]


if __name__ == "__main__":
    key = jax.random.PRNGKey(0)
    k1, k2, k3, k4 = jax.random.split(key, 4)

    B, G = 2, 8
    H = W = 16
    feat_stride = 16
    A = 9
    im_h = im_w = float(H * feat_stride)           # 256 x 256 image

    rpn_cls_score = jax.random.normal(k4, (B, 2 * A, H, W), dtype=jnp.float32)

    x1 = jax.random.uniform(k1, (B, G), minval=0.0, maxval=150.0)
    y1 = jax.random.uniform(k2, (B, G), minval=0.0, maxval=150.0)
    wh = jax.random.uniform(k3, (B, G, 2), minval=40.0, maxval=100.0)
    x2 = jnp.minimum(x1 + wh[..., 0], im_w - 1.0)
    y2 = jnp.minimum(y1 + wh[..., 1], im_h - 1.0)
    cls = jnp.ones((B, G), dtype=jnp.float32)
    gt_boxes = jnp.stack([x1, y1, x2, y2, cls], axis=-1).astype(jnp.float32)

    num_boxes = jnp.array([5, 3], dtype=jnp.int32)
    valid = (jnp.arange(G)[None, :] < num_boxes[:, None]).astype(jnp.float32)
    gt_boxes = gt_boxes * valid[..., None]          # zero-padded gt boxes

    im_info = jnp.array([[im_h, im_w, 1.0]] * B, dtype=jnp.float32)

    outs = anchor_target_layer(rpn_cls_score, gt_boxes, im_info, num_boxes,
                               feat_stride=feat_stride, scales=(8, 16, 32),
                               ratios=(0.5, 1, 2))
    outs = [jax.block_until_ready(o) for o in outs]

    labels_out, bbox_targets_out, inw_out, outw_out = outs
    assert labels_out.shape == (B, 1, A * H, W)
    assert bbox_targets_out.shape == (B, 4 * A, H, W)
    assert inw_out.shape == (B, 4 * A, H, W)
    assert outw_out.shape == (B, 4 * A, H, W)

    lv = np.asarray(labels_out)
    assert set(np.unique(lv)).issubset({-1.0, 0.0, 1.0})
    assert (lv == 1.0).sum() > 0          # gt-max tie promotion produces fg
    assert (lv == 0.0).sum() > 0          # low-overlap inside anchors -> bg
    assert np.isfinite(np.asarray(bbox_targets_out)).all()
    assert np.isfinite(np.asarray(outw_out)).all()

    print("KERNEL_OK")
</pallas_src>

<mosaic_0001>
module attributes {stable_mosaic.version = 11 : i64} {
  func.func @_stats_kernel(%arg0: i32, %arg1: i32, %arg2: memref<2xi32, #tpu.memory_space<smem>>, %arg3: memref<6x2304xf32, #tpu.memory_space<vmem>>, %arg4: memref<1x8x8xf32, #tpu.memory_space<vmem>>, %arg5: memref<1x1x8x1xf32, #tpu.memory_space<vmem>>) attributes {dimension_semantics = [#tpu.dimension_semantics<parallel>, #tpu.dimension_semantics<parallel>], iteration_bounds = array<i64: 1, 2>, scalar_prefetch = 1 : i64, scratch_operands = 0 : i64, tpu.core_type = #tpu.core_type<tc>, window_params = [{transform_indices = @transform_0, window_bounds = array<i64: 6, 2304>}, {transform_indices = @transform_1, window_bounds = array<i64: 1, 8, 8>}, {transform_indices = @transform_2, window_bounds = array<i64: 1, 1, 8, 1>}]} {
    %c0 = arith.constant 0 : index
    %0 = memref.load %arg2[%c0] : memref<2xi32, #tpu.memory_space<smem>>
    %1 = arith.sitofp %0 : i32 to f32
    %c1 = arith.constant 1 : index
    %2 = memref.load %arg2[%c1] : memref<2xi32, #tpu.memory_space<smem>>
    %3 = arith.sitofp %2 : i32 to f32
    %c0_0 = arith.constant 0 : index
    %c0_1 = arith.constant 0 : index
    %c0_2 = arith.constant 0 : index
    %4 = vector.load %arg4[%c0_0, %c0_1, %c0_2] : memref<1x8x8xf32, #tpu.memory_space<vmem>>, vector<1x8x8xf32>
    %5 = vector.shape_cast %4 : vector<1x8x8xf32> to vector<8x8xf32>
    %c0_3 = arith.constant 0 : index
    %c0_4 = arith.constant 0 : index
    %6 = vector.load %arg3[%c0_3, %c0_4] : memref<6x2304xf32, #tpu.memory_space<vmem>>, vector<1x2304xf32>
    %c1_5 = arith.constant 1 : index
    %c0_6 = arith.constant 0 : index
    %7 = vector.load %arg3[%c1_5, %c0_6] : memref<6x2304xf32, #tpu.memory_space<vmem>>, vector<1x2304xf32>
    %c2 = arith.constant 2 : index
    %c0_7 = arith.constant 0 : index
    %8 = vector.load %arg3[%c2, %c0_7] : memref<6x2304xf32, #tpu.memory_space<vmem>>, vector<1x2304xf32>
    %c3 = arith.constant 3 : index
    %c0_8 = arith.constant 0 : index
    %9 = vector.load %arg3[%c3, %c0_8] : memref<6x2304xf32, #tpu.memory_space<vmem>>, vector<1x2304xf32>
    %c4 = arith.constant 4 : index
    %c0_9 = arith.constant 0 : index
    %10 = vector.load %arg3[%c4, %c0_9] : memref<6x2304xf32, #tpu.memory_space<vmem>>, vector<1x2304xf32>
    %c5 = arith.constant 5 : index
    %c0_10 = arith.constant 0 : index
    %11 = vector.load %arg3[%c5, %c0_10] : memref<6x2304xf32, #tpu.memory_space<vmem>>, vector<1x2304xf32>
    %cst = arith.constant 5.000000e-01 : f32
    %12 = vector.broadcast %cst : f32 to vector<1x2304xf32>
    %13 = arith.cmpf ogt, %11, %12 : vector<1x2304xf32>
    %14 = vector.broadcast %3 : f32 to vector<1x2304xf32>
    %15 = arith.cmpf olt, %8, %14 : vector<1x2304xf32>
    %16 = arith.andi %13, %15 : vector<1x2304xi1>
    %17 = vector.broadcast %1 : f32 to vector<1x2304xf32>
    %18 = arith.cmpf olt, %9, %17 : vector<1x2304xf32>
    %19 = arith.andi %16, %18 : vector<1x2304xi1>
    %20 = vector.extract_strided_slice %5 {offsets = [0, 0], sizes = [8, 1], strides = [1, 1]} : vector<8x8xf32> to vector<8x1xf32>
    %21 = vector.extract_strided_slice %5 {offsets = [0, 1], sizes = [8, 1], strides = [1, 1]} : vector<8x8xf32> to vector<8x1xf32>
    %22 = vector.extract_strided_slice %5 {offsets = [0, 2], sizes = [8, 1], strides = [1, 1]} : vector<8x8xf32> to vector<8x1xf32>
    %23 = vector.extract_strided_slice %5 {offsets = [0, 3], sizes = [8, 1], strides = [1, 1]} : vector<8x8xf32> to vector<8x1xf32>
    %24 = vector.extract_strided_slice %5 {offsets = [0, 4], sizes = [8, 1], strides = [1, 1]} : vector<8x8xf32> to vector<8x1xf32>
    %25 = vector.extract_strided_slice %5 {offsets = [0, 5], sizes = [8, 1], strides = [1, 1]} : vector<8x8xf32> to vector<8x1xf32>
    %cst_11 = arith.constant 5.000000e-01 : f32
    %26 = vector.broadcast %cst_11 : f32 to vector<8x1xf32>
    %27 = arith.cmpf ogt, %25, %26 : vector<8x1xf32>
    %28 = vector.broadcast %8 : vector<1x2304xf32> to vector<8x2304xf32>
    %29 = vector.broadcast %22 : vector<8x1xf32> to vector<8x2304xf32>
    %30 = arith.minimumf %28, %29 : vector<8x2304xf32>
    %31 = vector.broadcast %6 : vector<1x2304xf32> to vector<8x2304xf32>
    %32 = vector.broadcast %20 : vector<8x1xf32> to vector<8x2304xf32>
    %33 = arith.maximumf %31, %32 : vector<8x2304xf32>
    %34 = arith.subf %30, %33 : vector<8x2304xf32>
    %cst_12 = arith.constant 1.000000e+00 : f32
    %35 = vector.broadcast %cst_12 : f32 to vector<8x2304xf32>
    %36 = arith.addf %34, %35 : vector<8x2304xf32>
    %cst_13 = arith.constant 0.000000e+00 : f32
    %37 = vector.broadcast %cst_13 : f32 to vector<8x2304xf32>
    %38 = arith.maximumf %36, %37 : vector<8x2304xf32>
    %39 = vector.broadcast %9 : vector<1x2304xf32> to vector<8x2304xf32>
    %40 = vector.broadcast %23 : vector<8x1xf32> to vector<8x2304xf32>
    %41 = arith.minimumf %39, %40 : vector<8x2304xf32>
    %42 = vector.broadcast %7 : vector<1x2304xf32> to vector<8x2304xf32>
    %43 = vector.broadcast %21 : vector<8x1xf32> to vector<8x2304xf32>
    %44 = arith.maximumf %42, %43 : vector<8x2304xf32>
    %45 = arith.subf %41, %44 : vector<8x2304xf32>
    %cst_14 = arith.constant 1.000000e+00 : f32
    %46 = vector.broadcast %cst_14 : f32 to vector<8x2304xf32>
    %47 = arith.addf %45, %46 : vector<8x2304xf32>
    %cst_15 = arith.constant 0.000000e+00 : f32
    %48 = vector.broadcast %cst_15 : f32 to vector<8x2304xf32>
    %49 = arith.maximumf %47, %48 : vector<8x2304xf32>
    %50 = arith.mulf %38, %49 : vector<8x2304xf32>
    %51 = vector.broadcast %10 : vector<1x2304xf32> to vector<8x2304xf32>
    %52 = vector.broadcast %24 : vector<8x1xf32> to vector<8x2304xf32>
    %53 = arith.addf %51, %52 : vector<8x2304xf32>
    %54 = arith.subf %53, %50 : vector<8x2304xf32>
    %55 = arith.divf %50, %54 : vector<8x2304xf32>
    %cst_16 = arith.constant 0.000000e+00 : f32
    %56 = vector.shape_cast %27 : vector<8x1xi1> to vector<8x1xi1>
    %57 = vector.broadcast %56 : vector<8x1xi1> to vector<8x2304xi1>
    %58 = vector.broadcast %cst_16 : f32 to vector<8x2304xf32>
    %59 = arith.select %57, %58, %55 : vector<8x2304xi1>, vector<8x2304xf32>
    %cst_17 = arith.constant -1.000000e+30 : f32
    %60 = vector.shape_cast %19 : vector<1x2304xi1> to vector<1x2304xi1>
    %61 = vector.broadcast %60 : vector<1x2304xi1> to vector<8x2304xi1>
    %62 = vector.broadcast %cst_17 : f32 to vector<8x2304xf32>
    %63 = arith.select %61, %59, %62 : vector<8x2304xi1>, vector<8x2304xf32>
    %cst_18 = arith.constant dense<0xFF800000> : vector<8xf32>
    %64 = vector.multi_reduction <maximumf>, %63, %cst_18 [1] : vector<8x2304xf32> to vector<8xf32>
    %65 = vector.shape_cast %64 : vector<8xf32> to vector<8x1xf32>
    %c0_19 = arith.constant 0 : index
    %c0_20 = arith.constant 0 : index
    %c0_21 = arith.constant 0 : index
    %c0_22 = arith.constant 0 : index
    %66 = vector.load %arg5[%c0_19, %c0_20, %c0_21, %c0_22] : memref<1x1x8x1xf32, #tpu.memory_space<vmem>>, vector<1x1x8x1xf32>
    %67 = vector.shape_cast %66 : vector<1x1x8x1xf32> to vector<8x1xf32>
    %68 = vector.shape_cast %65 : vector<8x1xf32> to vector<1x1x8x1xf32>
    tpu.vector_store %arg5[%c0_19, %c0_20, %c0_21, %c0_22], %68 {strides = array<i32>} : memref<1x1x8x1xf32, #tpu.memory_space<vmem>>, vector<1x1x8x1xf32>,
    return
  }
  func.func @transform_0(%arg0: i32, %arg1: i32, %arg2: memref<2xi32, #tpu.memory_space<smem>>) -> (i32, i32) {
    %c0_i32 = arith.constant 0 : i32
    %c0_i32_0 = arith.constant 0 : i32
    return %c0_i32, %arg0 : i32, i32
  }
  func.func @transform_1(%arg0: i32, %arg1: i32, %arg2: memref<2xi32, #tpu.memory_space<smem>>) -> (i32, i32, i32) {
    %c0_i32 = arith.constant 0 : i32
    %c0_i32_0 = arith.constant 0 : i32
    %c0_i32_1 = arith.constant 0 : i32
    return %arg1, %c0_i32, %c0_i32_0 : i32, i32, i32
  }
  func.func @transform_2(%arg0: i32, %arg1: i32, %arg2: memref<2xi32, #tpu.memory_space<smem>>) -> (i32, i32, i32, i32) {
    %c0_i32 = arith.constant 0 : i32
    %c0_i32_0 = arith.constant 0 : i32
    %c0_i32_1 = arith.constant 0 : i32
    return %arg0, %arg1, %c0_i32, %c0_i32_0 : i32, i32, i32, i32
  }
}

</mosaic_0001>

<bundles_post_ra>
// kernel: tpu_custom_call.1
= control target key start
LH: loop header
LB: loop body
LE: loop exit
PB: predicated region body
PF: predicated region fallthrough
CT: control target
= control target key end

     0   :  { %s2759_s0 = inlined_call_operand.hbm [shape: s32[2], index: 0, kind: input, shape index: {}]   ;;  %s2760_s1 = inlined_call_operand.hbm [shape: f32[6,2304], index: 1, kind: input, shape index: {}]   ;;  %s2761_s2 = inlined_call_operand.hbm [shape: f32[2,8,8], index: 2, kind: input, shape index: {}]   ;;  %s2762_s3 = inlined_call_operand.vmem [shape: f32[1,2,8,1], index: 3, kind: output, shape index: {}]  }
   0x1   :  { %s1433_s14 = scalar_lea.hbm %s2759_s0, 16 }
   0x2   :  { %p1434_p0 = scmp.ne.s32.totalorder %s2759_s0, %s1433_s14  ;;  %p1437_p1 = scmp.lt.u32.totalorder %s1433_s14, %s2759_s0 }
   0x4   :  { %p1439_p2 = pnand %p1437_p1, %p1434_p0 }
   0x6   :  { %1442 = shalt.err (!%p1439_p2)  }
   0x7   :  { %s1559_s19 = smov [#allocation3]  }
   0x8   :  { %9 = dma.hbm_to_smem %s2759_s0, 16, %s1559_s19, [#allocation2] }
   0x9   :  { %1525 = dma.done.wait [#allocation2], 16 }
   0xa   :  { %1526 = vsyncadd [#allocation2], 4294967280 }
   0xb   :  { %11 = sfence }
   0xc   :  { %12 = vsyncpa [#allocation5], 0 }
   0xd   :  { %13 = vsyncpa [#allocation7], 0 }
   0xe   :  { %15 = vsyncpa [#allocation7 + $0x1], 0  ;;  %s1600_s22 = smov 0   ;;  %s1602_s23 = smov 0  }
   0xf   :  { %s1604_s24 = smov 0   ;;  %s1606_s25 = smov 0  }
  0x10   :  { %s1608_s26 = smov 0   ;;  %s1610_s27 = smov 0  }
  0x11 LB: > { %s1304_s0 = sadd.s32 4294967295, %s1557_s27   ;;  %p79_p3 = scmp.ne.s32.totalorder %s1541_s23, %s1537_s22  ;;  %s1557_s27 = sphi %s1610_s27, %s21_s27   ;;  %s1553_s26 = sphi %s1608_s26, %s3027_s26   ;;  %s1549_s25 = sphi %s1606_s25, %s3026_s25   ;;  %s1545_s24 = sphi %s1604_s24, %s3025_s24   ;;  %s1541_s23 = sphi %s1602_s23, %s3024_s23   ;;  %s1537_s22 = sphi %s1600_s22, %s3023_s22  }
  0x12   : > { %p1630_p4 = scmp.eq.s32.totalorder %s1304_s0, 0  ;;  %p1306_p5 = scmp.ge.s32.totalorder %s1557_s27, 1 }
  0x13   : > { %p118_p6 = scmp.lt.s32.totalorder %s1557_s27, 3  ;;  %s1560_s4 = smov [#allocation4]  }
  0x14   : > { %s2814_s28 = scalar_select %p1630_p4, 1, 0 }
  0x15   : > { %p1638_p7 = por %p1630_p4, %p79_p3  ;;  %p1642_p8 = pnand %p1306_p5, %p118_p6 }
  0x16   : > { %s134_s5 = sshll.u32 %s1560_s4, 4  ;;  %s30_s7 = sadd.s32 1, %s1553_s26  ;;  %s135_s5 = int_to_ptr.vmem [resolvable:$true] %s134_s5 }
  0x17   : > { %s2815_s29 = scalar_select %p1638_p7, 1, 0 }
  0x18   : > { %s2816_s30 = scalar_select %p1642_p8, 1, 0 }
  0x19   : > { %p1324_p9 = pneg %p1642_p8  ;;  %s66_s8 = sadd.s32 1, %s1545_s24 }
  0x1a   : > { %p1656_p11 = scmp.ge.s32.totalorder %s30_s7, 2  ;;  %s1443_s12 = scalar_lea.hbm %s2760_s1, 2304 }
  0x1b   : > { %p1650_p10 = pnand %p1324_p9, %p1630_p4  ;;  %p1444_p12 = scmp.ne.s32.totalorder %s2760_s1, %s1443_s12 }
  0x1c   : > { %s2818_s9 = scalar_select %p1656_p11, 1, 0 }
  0x1d   : > { %p1445_p13 = pneg %p1650_p10  ;;  %p1450_p2 = scmp.lt.u32.totalorder %s1443_s12, %s2760_s1 }
  0x1f   : > { %p1446_p0 = pnand %p1445_p13, %p1444_p12 }
  0x21   : > { %p1447_p1 = pneg %p1446_p0 }
  0x23   : > { %p1452_p3 = pnand %p1450_p2, %p1447_p1 }
  0x25   : > { %1455 = shalt.err (!%p1452_p3)
}
  0x26   : > { %s1456_s17 = scalar_lea.vmem %s135_s5, 2304  ;;  %p1464_p7 = scmp.lt.s32.totalorder %s135_s5, %s135_s5 }
  0x27   : > { %p1457_p5 = scmp.ne.s32.totalorder %s135_s5, %s1456_s17  ;;  %p1465_p4 = scmp.lt.s32.totalorder %s1456_s17, %s1456_s17 }
  0x29   : > { %p1459_p6 = pnand %p1457_p5, %p1445_p13  ;;  %p1466_p8 = por %p1465_p4, %p1464_p7 }
  0x2b   : > { %p1460_p9 = pneg %p1459_p6 }
  0x2d   : > { %p1467_p11 = pnand %p1466_p8, %p1460_p9 }
  0x2f   : > { %1470 = shalt.err (!%p1467_p11)
}
  0x30   : > { %1327 = dma.hbm_to_vmem [thread:$0]  (!%p1650_p10), %s2760_s1, 2304, %s135_s5, [#allocation5]  }
  0x31   : > { %p2819_p12 = scmp.ne.s32.totalorder %s2818_s9, 0  ;;  %p73_p4 = scmp.ne.s32.totalorder %s1545_s24, %s1541_s23 }
  0x32   : > { %p74_p7 = scmp.eq.s32.totalorder %s1557_s27, 0  ;;  %p1333_p8 = scmp.lt.s32.totalorder %s1557_s27, 2 }
  0x33   : > { %s3029_s7 = smov (%p2819_p12, %s30_s7), 0  ;;  %s145_s21 = sand.u32 1, %s1545_s24  }
  0x34   : > { %s63_s20 = ssub.s32 %s1553_s26, %s3029_s7  ;;  %p75_p13 = por %p74_p7, %p73_p4 }
  0x35   : > { %p64_p11 = scmp.eq.s32.totalorder %s63_s20, 0  ;;  %s1310_s22 = sshll.u32 %s1553_s26, 7 }
  0x36   : > { %s1309_s4 = sshll.u32 %s145_s21, 3  ;;  %s1696_s5 = scalar_lea.hbm %s2761_s2, %s1310_s22 }
  0x37   : > { %s1691_s0 = scalar_select %p64_p11, %s1545_s24, %s66_s8  }
  0x38   : > { %s149_s9 = scalar_lea.vmem [#allocation6], %s1309_s4  ;;  %p1698_p10 = pnand %p1333_p8, %p75_p13 }
  0x39   : > { %s156_s11 = sshll.u32 %s149_s9, 4  ;;  %s146_s8 = scalar_lea.sflag [#allocation7], %s145_s21  ;;  %s1702_s11 = int_to_ptr.vmem [resolvable:$true] %s156_s11 }
  0x3a   : > { %s1471_s13 = scalar_lea.hbm %s1696_s5, 128  ;;  %p1473_p1 = pneg %p1698_p10 }
  0x3b   : > { %p1472_p0 = scmp.ne.s32.totalorder %s1696_s5, %s1471_s13  ;;  %s1476_s16 = scalar_lea.hbm %s2761_s2, 256 }
  0x3c   : > { %p1477_p5 = scmp.lt.u32.totalorder %s1696_s5, %s2761_s2  ;;  %p1478_p6 = scmp.lt.u32.totalorder %s1476_s16, %s1471_s13 }
  0x3d   : > { %p1474_p2 = pnand %p1473_p1, %p1472_p0  ;;  %p1480_p12 = scmp.lt.u32.totalorder %s1471_s13, %s1696_s5 }
  0x3e   : > { %p1479_p9 = por %p1478_p6, %p1477_p5 }
  0x3f   : > { %p1475_p3 = pneg %p1474_p2 }
  0x40   : > { %p1481_p4 = por %p1480_p12, %p1479_p9 }
  0x42   : > { %p1482_p7 = pnand %p1481_p4, %p1475_p3 }
  0x44   : > { %1485 = shalt.err (!%p1482_p7)
}
  0x45   : > { %s1486_s19 = scalar_lea.vmem %s1702_s11, 128  ;;  %s1561_s20 = smov [#allocation6]  }
  0x46   : > { %p1487_p8 = scmp.ne.s32.totalorder %s1702_s11, %s1486_s19  ;;  %s1491_s21 = sshll.u32 %s1561_s20, 4  ;;  %s1492_s21 = int_to_ptr.vmem [resolvable:$false] %s1491_s21 }
  0x47   : > { %s1493_s22 = scalar_lea.vmem %s1492_s21, 256  ;;  %p1494_p0 = scmp.lt.s32.totalorder %s1702_s11, %s1492_s21 }
  0x48   : > { %p1489_p11 = pnand %p1487_p8, %p1473_p1  ;;  %p1495_p2 = scmp.lt.s32.totalorder %s1493_s22, %s1486_s19 }
  0x4a   : > { %p1490_p13 = pneg %p1489_p11  ;;  %p1496_p5 = por %p1495_p2, %p1494_p0 }
  0x4c   : > { %p1497_p6 = pnand %p1496_p5, %p1490_p13 }
  0x4e   : > { %1500 = shalt.err (!%p1497_p6)
}
  0x4f   : > { %1331 = dma.hbm_to_vmem [thread:$0]  (!%p1698_p10), %s1696_s5, 128, %s1702_s11, %s146_s8  }
  0x50   : > { %p2821_p3 = scmp.ne.s32.totalorder %s2816_s30, 0 }
  0x52   : > { %165 = sbr.rel (%p2821_p3) target bundleno = 480 (0x1e0), region = 28 }
  0x59   : > { %p2822_p1 = scmp.ne.s32.totalorder %s2814_s28, 0 }
  0x5b   : > { %1528 = dma.done.wait (%p2822_p1), [#allocation5], 2304  }
  0x5c   : > { %1530 = vsyncadd (%p2822_p1), [#allocation5], 4294964992  ;;  %s171_s4 = sand.u32 1, %s1541_s23   ;;  %p2823_p9 = scmp.ne.s32.totalorder %s2815_s29, 0 }
  0x5d   : > { %s1313_s6 = sshll.u32 %s171_s4, 3  ;;  %s172_s10 = scalar_lea.sflag [#allocation7], %s171_s4 }
  0x5e   : > { %s175_s9 = scalar_lea.vmem [#allocation6], %s1313_s6 }
  0x5f   : > { %1532 = dma.done.wait (%p2823_p9), %s172_s10, 128  }
  0x60   : > { %1534 = vsyncadd (%p2823_p9), %s172_s10, 4294967168  ;;  %v1562_v0 = vmov 3   ;;  %v1563_v1 = vmov 2   ;;  %v212_v2 = vld [vmem:[%s175_s9] sm:$0xff]  ;;  %v1564_v3 = vmov 1   ;;  %v1565_v4 = vmov 0  }
  0x61   : > { %1393 = vset.pattern.permute.xlu1 %v1562_v0  ;;  %1391 = vset.pattern.permute.xlu0 %v1563_v1  ;;  %vm289_vm0 = vcmp.gt.f32.partialorder %v212_v2, 0.5  ;;  %v1566_v6 = vmov 4   ;;  %v1567_v7 = vmov 5   ;;  %v293_v8 = vlaneseq  ;;  %s1315_s28 = sld [smem:[#allocation3 + $0x1]]  ;;  %s208_s29 = sld [smem:[#allocation3]] }
  0x62   : > { %669 = vperm.xlu1 %1393, %v212_v2   ;;  %385 = vperm.xlu0 %1391, %v212_v2   ;;  %v1046_v5 = vsel %vm289_vm0, 1, %v1565_v4  ;;  %v263_v11 = vld [vmem:[#allocation4 + $0x5] ss:$8 sm:$0xf]  ;;  %p202_p10 = scmp.lt.s32.totalorder %s1549_s25, 1 }
  0x63   : > { %v294_v9 = vshrl.u32 %v293_v8, 7  ;;  %v264_v12 = vld [vmem:[#allocation4 + $0x5] ss:$8 sm:$0xf0] }
  0x64   : > { %v267_v13 = vld [vmem:[#allocation4 + $0x45] ss:$8 sm:$0xf]  ;;  %v233_v15 = vld [vmem:[#allocation4 + $0x2] ss:$8 sm:$0xf]  ;;  %v265_v19 = vor.u32 %v264_v12, %v263_v11 }
  0x65   : > { %v1742_v10 = vsub.s32 0, %v294_v9  ;;  %v268_v14 = vld [vmem:[#allocation4 + $0x45] ss:$8 sm:$0xf0]  ;;  %v1746_v22 = vsub.s32 1, %v294_v9  ;;  %v1748_v23 = vsub.s32 2, %v294_v9 }
  0x66   : > { %1394 = vset.pattern.permute.xlu1 %v1564_v3  ;;  %1392 = vset.pattern.permute.xlu0 %v1565_v4  ;;  %v234_v16 = vld [vmem:[#allocation4 + $0x2] ss:$8 sm:$0xf0]  ;;  %v269_v20 = vor.u32 %v268_v14, %v267_v13  ;;  %v243_v25 = vld [vmem:[#allocation4 + $0x3] ss:$8 sm:$0xf] }
  0x67   : > { %784 = vperm.xlu1 %1394, %v212_v2   ;;  %500 = vperm.xlu0 %1392, %v212_v2   ;;  %2824 = vst [vmem:[#allocation11_spill] sm:$0xff] %v1742_v10  ;;  %s211_s30 = scvt.s32.f32 %s1315_s28  ;;  %v237_v17 = vld [vmem:[#allocation4 + $0x42] ss:$8 sm:$0xf]  ;;  %s209_s5 = scvt.s32.f32 %s208_s29  ;;  %v1750_v24 = vor.u32 %v234_v16, %v233_v15  ;;  %vm272_vm1 = vcmp.gt.f32.partialorder %v265_v19, 0.5  ;;  %v1758_v31 = vsub.s32 3, %v294_v9 }
  0x68   : > { %v238_v18 = vld [vmem:[#allocation4 + $0x42] ss:$8 sm:$0xf0]  ;;  %v244_v26 = vld [vmem:[#allocation4 + $0x3] ss:$8 sm:$0xf0] }
  0x69   : > { %v1744_v21 = vstv %s211_s30  ;;  %v1752_v27 = vor.u32 %v238_v18, %v237_v17  ;;  %v247_v28 = vld [vmem:[#allocation4 + $0x43] ss:$8 sm:$0xf]  ;;  %v1756_v30 = vstv %s209_s5  ;;  %v1760_v32 = vor.u32 %v244_v26, %v243_v25  ;;  %v213_v38 = vld [vmem:[#allocation4] ss:$8 sm:$0xf] }
  0x6a   : > { %v248_v29 = vld [vmem:[#allocation4 + $0x43] ss:$8 sm:$0xf0]  ;;  %vm276_vm2 = vcmp.lt.f32.partialorder %v1750_v24, %v1744_v21  ;;  %vm273_vm3 = vcmp.gt.f32.partialorder %v269_v20, 0.5  ;;  %v1764_v33 = vsub.s32 4, %v294_v9  ;;  %v1768_v35 = vsub.s32 5, %v294_v9 }
  0x6b   : > { %1395 = vset.pattern.permute.xlu1 %v1566_v6  ;;  %1396 = vset.pattern.permute.xlu0 %v1567_v7  ;;  %vm277_vm4 = vcmp.lt.f32.partialorder %v1752_v27, %v1744_v21  ;;  %v1766_v34 = vor.u32 %v248_v29, %v247_v28  ;;  %v1770_v36 = vsub.s32 6, %v294_v9  ;;  %v1772_v37 = vsub.s32 7, %v294_v9  ;;  %vm279_vm5 = vmand %vm272_vm1, %vm276_vm2  ;;  %v214_v39 = vld [vmem:[#allocation4] ss:$8 sm:$0xf0]  ;;  %s3031_s25 = smov (!%p202_p10, %s1549_s25), 1 }
  0x6c   : > { %971 = vperm.xlu1 %1395, %v212_v2   ;;  %1048 = vperm.xlu0 %1396, %v1046_v5   ;;  %2825 = vst [vmem:[#allocation12_spill] sm:$0xff] %v1764_v33  ;;  %2827 = vst [vmem:[#allocation14_spill] sm:$0xff] %v1768_v35  ;;  %vm283_vm6 = vcmp.lt.f32.partialorder %v1760_v32, %v1756_v30  ;;  %v296_v40 = vrot.slane %v1750_v24, %v1742_v10  ;;  %v217_v44 = vld [vmem:[#allocation4 + $0x40] ss:$8 sm:$0xf]  ;;  %s1314_s11 = sshll.u32 %s3031_s25, 3 }
  0x6d   : > { %2826 = vst [vmem:[#allocation13_spill] sm:$0xff] %v1766_v34  ;;  %2828 = vst [vmem:[#allocation15_spill] sm:$0xff] %v1770_v36  ;;  %vm284_vm8 = vcmp.lt.f32.partialorder %v1766_v34, %v1756_v30  ;;  %v300_v41 = vrot.slane %v1750_v24, %v1746_v22  ;;  %v1786_v43 = vor.u32 %v214_v39, %v213_v38  ;;  %v218_v45 = vld [vmem:[#allocation4 + $0x40] ss:$8 sm:$0xf0]  ;;  %s207_s13 = scalar_lea.vmem %s2762_s3, %s1314_s11 }
  0x6e   : > { %2829 = vst [vmem:[#allocation16_spill] sm:$0xff] %v1772_v37  ;;  %vm280_vm7 = vmand %vm273_vm3, %vm277_vm4  ;;  %v304_v46 = vrot.slane %v1750_v24, %v1748_v23  ;;  %v308_v47 = vrot.slane %v1750_v24, %v1758_v31  ;;  %v312_v48 = vrot.slane %v1750_v24, %v1764_v33  ;;  %v223_v50 = vld [vmem:[#allocation4 + $0x1] ss:$8 sm:$0xf]  ;;  %v316_v52 = vrot.slane %v1750_v24, %v1768_v35 }
  0x6f   : > { %vm1782_vm9 = vmand %vm279_vm5, %vm283_vm6  ;;  %v224_v51 = vld [vmem:[#allocation4 + $0x1] ss:$8 sm:$0xf0]  ;;  %v320_v53 = vrot.slane %v1750_v24, %v1770_v36  ;;  %v324_v54 = vrot.slane %v1750_v24, %v1772_v37  ;;  %v328_v55 = vrot.slane %v1752_v27, %v1742_v10  ;;  %v332_v58 = vrot.slane %v1752_v27, %v1746_v22  ;;  %v1821_v0 = vld [vmem:[#allocation4 + $0x82] ss:$8 sm:$0x3] }
  0x70   : > { %vm1794_vm10 = vmand %vm280_vm7, %vm284_vm8  ;;  %v227_v56 = vld [vmem:[#allocation4 + $0x41] ss:$8 sm:$0xf]  ;;  %v336_v59 = vrot.slane %v1752_v27, %v1748_v23  ;;  %v340_v60 = vrot.slane %v1752_v27, %v1758_v31  ;;  %v344_v61 = vrot.slane %v1752_v27, %v1764_v33  ;;  %v1817_v62 = vsel %vm1782_vm9, 1, %v1565_v4 }
  0x71   : > { %v228_v57 = vld [vmem:[#allocation4 + $0x41] ss:$8 sm:$0xf0]  ;;  %2834 = vst [vmem:[#allocation17_spill] sm:$0xff] %v1817_v62  ;;  %v1819_v63 = vor.u32 %v218_v45, %v217_v44  ;;  %v348_v1 = vrot.slane %v1752_v27, %v1768_v35  ;;  %v352_v2 = vrot.slane %v1752_v27, %v1770_v36  ;;  %v1830_v3 = vsel %vm1794_vm10, 1, %v1565_v4 }
  0x72   : > { %2835 = vst [vmem:[#allocation18_spill] sm:$0xff] %v1830_v3  ;;  %v1832_v5 = vor.u32 %v224_v51, %v223_v50  ;;  %v356_v6 = vrot.slane %v1752_v27, %v1772_v37  ;;  %v412_v7 = vrot.slane %v1786_v43, %v1742_v10  ;;  %v1838_v8 = vor.u32 %v228_v57, %v227_v56  ;;  %v253_v9 = vld [vmem:[#allocation4 + $0x4] ss:$8 sm:$0xf] }
  0x73   : > { %v254_v11 = vld [vmem:[#allocation4 + $0x4] ss:$8 sm:$0xf0]  ;;  %v416_v12 = vrot.slane %v1786_v43, %v1746_v22  ;;  %v420_v13 = vrot.slane %v1786_v43, %v1748_v23  ;;  %v424_v14 = vrot.slane %v1786_v43, %v1758_v31  ;;  %v360_v17 = vrot.slane %v1821_v0, %v1742_v10  ;;  %v1854_v25 = vld [vmem:[#allocation4 + $0x80] ss:$8 sm:$0x3] }
  0x74   : > { %2836 = vst [vmem:[#allocation19_spill] sm:$0xff] %v1832_v5  ;;  %2837 = vst [vmem:[#allocation20_spill] sm:$0xff] %v1838_v8  ;;  %v257_v15 = vld [vmem:[#allocation4 + $0x44] ss:$8 sm:$0xf]  ;;  %v428_v18 = vrot.slane %v1786_v43, %v1764_v33  ;;  %v432_v19 = vrot.slane %v1786_v43, %v1768_v35  ;;  %v436_v20 = vrot.slane %v1786_v43, %v1770_v36 }
  0x75   : > { %v258_v16 = vld [vmem:[#allocation4 + $0x44] ss:$8 sm:$0xf0]  ;;  %v271_v26 = vld [vmem:[#allocation4 + $0x85] ss:$8 sm:$0x3]  ;;  %vm278_vm11 = vcmp.lt.f32.partialorder %v1821_v0, %v1744_v21  ;;  %v364_v28 = vrot.slane %v1821_v0, %v1746_v22  ;;  %v440_v29 = vrot.slane %v1786_v43, %v1772_v37  ;;  %v444_v38 = vrot.slane %v1819_v63, %v1742_v10 }
  0x76   : > { %v1866_v42 = vor.u32 %v254_v11, %v253_v9  ;;  %v1874_v50 = vld [vmem:[#allocation4 + $0x83] ss:$8 sm:$0x3]  ;;  %v1876_v51 = vor.u32 %v258_v16, %v257_v15  ;;  %vm274_vm12 = vcmp.gt.f32.partialorder %v271_v26, 0.5  ;;  %v581_v16 = vrot.slane %v1760_v32, %v1742_v10 }
  0x77   : > { %2839 = vst [vmem:[#allocation22_spill] sm:$0xff] %v1874_v50  ;;  %vm285_vm13 = vcmp.lt.f32.partialorder %v1874_v50, %v1756_v30  ;;  %v585_v56 = vrot.slane %v1760_v32, %v1746_v22  ;;  %v1932_v39 = vld [vmem:[#allocation4 + $0x81] ss:$8 sm:$0x3]  ;;  %vm281_vm14 = vmand %vm274_vm12, %vm278_vm11  ;;  %v2849_v43 = vrot.slane %v1819_v63, %v1764_v33  ;;  %v2851_v57 = vrot.slane %v1819_v63, %v1770_v36 }
  0x78   : > { %2838 = vst [vmem:[#allocation21_spill] sm:$0xff] %v1866_v42  ;;  %2840 = vst [vmem:[#allocation23_spill] sm:$0xff] %v1876_v51  ;;  %v1970_v9 = vld [vmem:[#allocation4 + $0x84] ss:$8 sm:$0x3]  ;;  %v2853_v3 = vrot.slane %v1854_v25, %v1742_v10 }
  0x79   : > { %2841 = vst [vmem:[#allocation24_spill] sm:$0xff] %v1932_v39  ;;  %2842 = vst [vmem:[#allocation25_spill] sm:$0xff] %v1970_v9  ;;  %v2854_v9 = vrot.slane %v1854_v25, %v1746_v22 }
  0x7a   : > { %vm288_vm15 = vmand %vm281_vm14, %vm285_vm13 }
  0x7b   : > { %v2010_v30 = vsel %vm288_vm15, 1, %v1565_v4 }
  0x7c   : > { %2843 = vst [vmem:[#allocation26_spill] sm:$0xff] %v2010_v30  ;;  %v2852_v30 = vrot.slane %v1819_v63, %v1772_v37 }
  0xe1   : > { %v386_v11 = vpop.permute.xlu0 %385  ;;  %v2060_v15 = vpop.permute.xlu1 %669 }
  0xe2   : > { %v388_v44 = vmin.f32 %v296_v40, %v386_v11  ;;  %v389_v21 = vmin.f32 %v300_v41, %v386_v11  ;;  %v390_v49 = vmin.f32 %v304_v46, %v386_v11  ;;  %v391_v26 = vmin.f32 %v308_v47, %v386_v11 }
  0xe3   : > { %v392_v45 = vmin.f32 %v312_v48, %v386_v11  ;;  %v393_v40 = vmin.f32 %v316_v52, %v386_v11  ;;  %v394_v41 = vmin.f32 %v320_v53, %v386_v11  ;;  %v395_v46 = vmin.f32 %v324_v54, %v386_v11 }
  0xe4   : > { %v396_v47 = vmin.f32 %v328_v55, %v386_v11  ;;  %v397_v48 = vmin.f32 %v332_v58, %v386_v11  ;;  %v398_v52 = vmin.f32 %v336_v59, %v386_v11  ;;  %v399_v53 = vmin.f32 %v340_v60, %v386_v11 }
  0xe5   : > { %v400_v24 = vmin.f32 %v344_v61, %v386_v11  ;;  %v401_v54 = vmin.f32 %v348_v1, %v386_v11  ;;  %v402_v55 = vmin.f32 %v352_v2, %v386_v11  ;;  %v403_v58 = vmin.f32 %v356_v6, %v386_v11 }
  0xe6   : > { %v501_v4 = vpop.permute.xlu0 %500  ;;  %v404_v59 = vmin.f32 %v360_v17, %v386_v11  ;;  %v405_v60 = vmin.f32 %v364_v28, %v386_v11  ;;  %v2108_v61 = vmin.f32 %v581_v16, %v2060_v15  ;;  %v2114_v27 = vmin.f32 %v585_v56, %v2060_v15 }
  0xe7   : > { %v503_v1 = vmax.f32 %v412_v7, %v501_v4  ;;  %v504_v0 = vmax.f32 %v416_v12, %v501_v4  ;;  %v505_v2 = vmax.f32 %v420_v13, %v501_v4  ;;  %v506_v6 = vmax.f32 %v424_v14, %v501_v4 }
  0xe8   : > { %2844 = vst [vmem:[#allocation27_spill] sm:$0xff] %v2108_v61  ;;  %2845 = vst [vmem:[#allocation28_spill] sm:$0xff] %v2114_v27  ;;  %v507_v17 = vmax.f32 %v428_v18, %v501_v4  ;;  %v508_v7 = vmax.f32 %v432_v19, %v501_v4  ;;  %v509_v12 = vmax.f32 %v436_v20, %v501_v4 }
  0xe9   : > { %v510_v13 = vmax.f32 %v440_v29, %v501_v4  ;;  %v511_v14 = vmax.f32 %v444_v38, %v501_v4  ;;  %v2846_v28 = vrot.slane %v1819_v63, %v1746_v22  ;;  %v2847_v56 = vrot.slane %v1819_v63, %v1748_v23 }
  0xea   : > { %v2848_v11 = vrot.slane %v1819_v63, %v1758_v31  ;;  %v515_v29 = vmax.f32 %v2849_v43, %v501_v4  ;;  %v2850_v16 = vrot.slane %v1819_v63, %v1768_v35  ;;  %v520_v43 = vmax.f32 %v2854_v9, %v501_v4 }
  0xeb   : > { %v512_v18 = vmax.f32 %v2846_v28, %v501_v4  ;;  %v513_v19 = vmax.f32 %v2847_v56, %v501_v4  ;;  %v517_v28 = vmax.f32 %v2851_v57, %v501_v4  ;;  %v518_v56 = vmax.f32 %v2852_v30, %v501_v4 }
  0xec   : > { %v514_v20 = vmax.f32 %v2848_v11, %v501_v4  ;;  %v516_v38 = vmax.f32 %v2850_v16, %v501_v4  ;;  %v519_v11 = vmax.f32 %v2853_v3, %v501_v4  ;;  %v521_v62 = vsub.f32 %v388_v44, %v503_v1  ;;  %v2886_v1 = vld [vmem:[#allocation22_spill] sm:$0xff] }
  0xed   : > { %v522_v51 = vsub.f32 %v389_v21, %v504_v0  ;;  %v523_v42 = vsub.f32 %v390_v49, %v505_v2  ;;  %v524_v16 = vsub.f32 %v391_v26, %v506_v6  ;;  %v525_v27 = vsub.f32 %v392_v45, %v507_v17  ;;  %v785_v2 = vpop.permute.xlu1 %784 }
  0xee   : > { %v526_v39 = vsub.f32 %v393_v40, %v508_v7  ;;  %v527_v61 = vsub.f32 %v394_v41, %v509_v12  ;;  %v528_v57 = vsub.f32 %v395_v46, %v510_v13  ;;  %v529_v8 = vsub.f32 %v396_v47, %v511_v14 }
  0xef   : > { %v530_v5 = vsub.f32 %v397_v48, %v512_v18  ;;  %v531_v63 = vsub.f32 %v398_v52, %v513_v19  ;;  %v532_v30 = vsub.f32 %v399_v53, %v514_v20  ;;  %v533_v50 = vsub.f32 %v400_v24, %v515_v29  ;;  %v2872_v20 = vld [vmem:[#allocation15_spill] sm:$0xff] }
  0xf0   : > { %v534_v34 = vsub.f32 %v401_v54, %v516_v38  ;;  %v535_v10 = vsub.f32 %v402_v55, %v517_v28  ;;  %v536_v3 = vsub.f32 %v403_v58, %v518_v56  ;;  %v537_v37 = vsub.f32 %v404_v59, %v519_v11  ;;  %v2874_v28 = vld [vmem:[#allocation16_spill] sm:$0xff] }
  0xf1   : > { %v538_v36 = vsub.f32 %v405_v60, %v520_v43  ;;  %v2170_v25 = vadd.f32 1.0, %v521_v62  ;;  %v2172_v44 = vadd.f32 1.0, %v522_v51  ;;  %v2174_v49 = vadd.f32 1.0, %v523_v42  ;;  %v2876_v43 = vld [vmem:[#allocation13_spill] sm:$0xff] }
  0xf2   : > { %v2176_v45 = vadd.f32 1.0, %v524_v16  ;;  %v2178_v9 = vadd.f32 1.0, %v525_v27  ;;  %v2180_v21 = vadd.f32 1.0, %v526_v39  ;;  %v2182_v26 = vadd.f32 1.0, %v527_v61  ;;  %v2877_v16 = vld [vmem:[#allocation11_spill] sm:$0xff] }
  0xf3   : > { %v2184_v4 = vadd.f32 1.0, %v528_v57  ;;  %v2186_v40 = vadd.f32 1.0, %v529_v8  ;;  %v2188_v41 = vadd.f32 1.0, %v530_v5  ;;  %v2190_v62 = vadd.f32 1.0, %v531_v63  ;;  %v2888_v61 = vld [vmem:[#allocation19_spill] sm:$0xff] }
  0xf4   : > { %2855 = vst [vmem:[#allocation29_spill] sm:$0xff] %v2180_v21  ;;  %2856 = vst [vmem:[#allocation30_spill] sm:$0xff] %v2182_v26  ;;  %v2192_v51 = vadd.f32 1.0, %v532_v30  ;;  %v2194_v42 = vadd.f32 1.0, %v533_v50  ;;  %v2196_v46 = vadd.f32 1.0, %v534_v34  ;;  %v2198_v47 = vadd.f32 1.0, %v535_v10 }
  0xf5   : > { %2857 = vst [vmem:[#allocation31_spill] sm:$0xff] %v2184_v4  ;;  %2858 = vst [vmem:[#allocation32_spill] sm:$0xff] %v2186_v40  ;;  %v2200_v39 = vadd.f32 1.0, %v536_v3  ;;  %v2202_v48 = vadd.f32 1.0, %v537_v37  ;;  %v2204_v52 = vadd.f32 1.0, %v538_v36  ;;  %v2868_v6 = vrot.slane %v1760_v32, %v1748_v23  ;;  %v2898_v10 = vld [vmem:[#allocation20_spill] sm:$0xff] }
  0xf6   : > { %2859 = vst [vmem:[#allocation33_spill] sm:$0xff] %v2188_v41  ;;  %2860 = vst [vmem:[#allocation34_spill] sm:$0xff] %v2190_v62  ;;  %v2869_v7 = vrot.slane %v1760_v32, %v1758_v31  ;;  %v2870_v13 = vrot.slane %v1760_v32, %v1764_v33  ;;  %v2871_v18 = vrot.slane %v1760_v32, %v1768_v35 }
  0xf7   : > { %2861 = vst [vmem:[#allocation35_spill] sm:$0xff] %v2192_v51  ;;  %2862 = vst [vmem:[#allocation36_spill] sm:$0xff] %v2194_v42  ;;  %v674_v17 = vmin.f32 %v2868_v6, %v2060_v15  ;;  %v2873_v29 = vrot.slane %v1760_v32, %v2872_v20  ;;  %v2875_v56 = vrot.slane %v1760_v32, %v2874_v28  ;;  %v2911_v51 = vld [vmem:[#allocation28_spill] sm:$0xff] }
  0xf8   : > { %2863 = vst [vmem:[#allocation37_spill] sm:$0xff] %v2196_v46  ;;  %2864 = vst [vmem:[#allocation38_spill] sm:$0xff] %v2198_v47  ;;  %v675_v12 = vmin.f32 %v2869_v7, %v2060_v15  ;;  %v676_v14 = vmin.f32 %v2870_v13, %v2060_v15  ;;  %v677_v19 = vmin.f32 %v2871_v18, %v2060_v15  ;;  %v2908_v47 = vld [vmem:[#allocation24_spill] sm:$0xff] }
  0xf9   : > { %2865 = vst [vmem:[#allocation39_spill] sm:$0xff] %v2200_v39  ;;  %2866 = vst [vmem:[#allocation40_spill] sm:$0xff] %v2202_v48  ;;  %v678_v38 = vmin.f32 %v2873_v29, %v2060_v15  ;;  %v679_v11 = vmin.f32 %v2875_v56, %v2060_v15  ;;  %v2878_v57 = vrot.slane %v2876_v43, %v2877_v16 }
  0xfa   : > { %2867 = vst [vmem:[#allocation41_spill] sm:$0xff] %v2204_v52  ;;  %v2879_v30 = vrot.slane %v2876_v43, %v1746_v22  ;;  %v2880_v6 = vrot.slane %v2876_v43, %v1748_v23  ;;  %v2881_v32 = vrot.slane %v2876_v43, %v1758_v31  ;;  %v2882_v18 = vrot.slane %v2876_v43, %v1764_v33  ;;  %v2906_v52 = vld [vmem:[#allocation27_spill] sm:$0xff] }
  0xfb   : > { %v680_v63 = vmin.f32 %v2878_v57, %v2060_v15  ;;  %v2883_v56 = vrot.slane %v2876_v43, %v1768_v35  ;;  %v2885_v0 = vrot.slane %v2876_v43, %v2874_v28  ;;  %v2887_v27 = vrot.slane %v2886_v1, %v2877_v16 }
  0xfc   : > { %v681_v3 = vmin.f32 %v2879_v30, %v2060_v15  ;;  %v682_v7 = vmin.f32 %v2880_v6, %v2060_v15  ;;  %v683_v13 = vmin.f32 %v2881_v32, %v2060_v15  ;;  %v684_v29 = vmin.f32 %v2882_v18, %v2060_v15 }
  0xfd   : > { %v685_v57 = vmin.f32 %v2883_v56, %v2060_v15  ;;  %v2884_v30 = vrot.slane %v2876_v43, %v2872_v20  ;;  %v687_v32 = vmin.f32 %v2885_v0, %v2060_v15  ;;  %v688_v18 = vmin.f32 %v2887_v27, %v2060_v15 }
  0xfe   : > { %v2889_v60 = vrot.slane %v2888_v61, %v2877_v16  ;;  %v2890_v56 = vrot.slane %v2886_v1, %v1746_v22  ;;  %v2892_v0 = vrot.slane %v2888_v61, %v1748_v23  ;;  %v2893_v27 = vrot.slane %v2888_v61, %v1758_v31 }
  0xff   : > { %v686_v6 = vmin.f32 %v2884_v30, %v2060_v15  ;;  %v2891_v30 = vrot.slane %v2888_v61, %v1746_v22  ;;  %v2895_v1 = vrot.slane %v2888_v61, %v1768_v35  ;;  %v2897_v54 = vrot.slane %v2888_v61, %v2874_v28 }
 0x100   : > { %v787_v59 = vmax.f32 %v2889_v60, %v785_v2  ;;  %v689_v58 = vmin.f32 %v2890_v56, %v2060_v15  ;;  %v789_v43 = vmax.f32 %v2892_v0, %v785_v2  ;;  %v790_v36 = vmax.f32 %v2893_v27, %v785_v2 }
 0x101   : > { %v788_v55 = vmax.f32 %v2891_v30, %v785_v2  ;;  %v2894_v60 = vrot.slane %v2888_v61, %v1764_v33  ;;  %v792_v15 = vmax.f32 %v2895_v1, %v785_v2  ;;  %v2896_v56 = vrot.slane %v2888_v61, %v2872_v20 }
 0x102   : > { %v794_v0 = vmax.f32 %v2897_v54, %v785_v2  ;;  %v2899_v34 = vrot.slane %v2898_v10, %v2877_v16  ;;  %v2900_v50 = vrot.slane %v2898_v10, %v1746_v22  ;;  %v2901_v24 = vrot.slane %v2898_v10, %v1748_v23 }
 0x103   : > { %v791_v37 = vmax.f32 %v2894_v60, %v785_v2  ;;  %v793_v30 = vmax.f32 %v2896_v56, %v785_v2  ;;  %v2902_v53 = vrot.slane %v2898_v10, %v1758_v31  ;;  %v2903_v61 = vrot.slane %v2898_v10, %v1764_v33 }
 0x104   : > { %v795_v27 = vmax.f32 %v2899_v34, %v785_v2  ;;  %v796_v60 = vmax.f32 %v2900_v50, %v785_v2  ;;  %v797_v1 = vmax.f32 %v2901_v24, %v785_v2  ;;  %v2904_v5 = vrot.slane %v2898_v10, %v1768_v35 }
 0x105   : > { %v798_v56 = vmax.f32 %v2902_v53, %v785_v2  ;;  %v799_v54 = vmax.f32 %v2903_v61, %v785_v2  ;;  %v2905_v8 = vrot.slane %v2898_v10, %v2872_v20  ;;  %v805_v48 = vsub.f32 %v2906_v52, %v787_v59 }
 0x106   : > { %v800_v34 = vmax.f32 %v2904_v5, %v785_v2  ;;  %v2907_v24 = vrot.slane %v2898_v10, %v2874_v28  ;;  %v2909_v53 = vrot.slane %v2908_v47, %v2877_v16  ;;  %v2910_v61 = vrot.slane %v2908_v47, %v1746_v22 }
 0x107   : > { %v801_v50 = vmax.f32 %v2905_v8, %v785_v2  ;;  %v806_v5 = vsub.f32 %v2911_v51, %v788_v55  ;;  %v807_v62 = vsub.f32 %v674_v17, %v789_v43  ;;  %v808_v41 = vsub.f32 %v675_v12, %v790_v36 }
 0x108   : > { %v802_v39 = vmax.f32 %v2907_v24, %v785_v2  ;;  %v803_v46 = vmax.f32 %v2909_v53, %v785_v2  ;;  %v804_v42 = vmax.f32 %v2910_v61, %v785_v2  ;;  %v809_v40 = vsub.f32 %v676_v14, %v791_v37 }
 0x109   : > { %v810_v8 = vsub.f32 %v677_v19, %v792_v15  ;;  %v811_v4 = vsub.f32 %v678_v38, %v793_v30  ;;  %v812_v52 = vsub.f32 %v679_v11, %v794_v0  ;;  %v813_v59 = vsub.f32 %v680_v63, %v795_v27  ;;  %v2344_v11 = vpop.permute.xlu1 %971 }
 0x10a   : > { %v814_v20 = vsub.f32 %v681_v3, %v796_v60  ;;  %v815_v10 = vsub.f32 %v682_v7, %v797_v1  ;;  %v816_v24 = vsub.f32 %v683_v13, %v798_v56  ;;  %v817_v28 = vsub.f32 %v684_v29, %v799_v54 }
 0x10b   : > { %v823_v26 = vadd.f32 1.0, %v805_v48  ;;  %v818_v35 = vsub.f32 %v685_v57, %v800_v34  ;;  %v819_v53 = vsub.f32 %v686_v6, %v801_v50  ;;  %v820_v21 = vsub.f32 %v687_v32, %v802_v39 }
 0x10c   : > { %v824_v33 = vadd.f32 1.0, %v806_v5  ;;  %v821_v47 = vsub.f32 %v688_v18, %v803_v46  ;;  %v822_v2 = vsub.f32 %v689_v58, %v804_v42  ;;  %v825_v61 = vadd.f32 1.0, %v807_v62 }
 0x10d   : > { %v826_v51 = vadd.f32 1.0, %v808_v41  ;;  %v827_v55 = vadd.f32 1.0, %v809_v40  ;;  %v828_v36 = vadd.f32 1.0, %v810_v8  ;;  %v829_v37 = vadd.f32 1.0, %v811_v4 }
 0x10e   : > { %v830_v17 = vadd.f32 1.0, %v812_v52  ;;  %v831_v12 = vadd.f32 1.0, %v813_v59  ;;  %v832_v14 = vadd.f32 1.0, %v814_v20  ;;  %v833_v19 = vadd.f32 1.0, %v815_v10  ;;  %v2922_v52 = vld [vmem:[#allocation12_spill] sm:$0xff] }
 0x10f   : > { %v841_v38 = vmax.f32 %v823_v26, 0.0  ;;  %v834_v63 = vadd.f32 1.0, %v816_v24  ;;  %v835_v48 = vadd.f32 1.0, %v817_v28  ;;  %v2346_v3 = vadd.f32 1.0, %v818_v35  ;;  %v2913_v35 = vld [vmem:[#allocation21_spill] sm:$0xff] }
 0x110   : > { %v842_v39 = vmax.f32 %v824_v33, 0.0  ;;  %v2348_v7 = vadd.f32 1.0, %v819_v53  ;;  %v2350_v42 = vadd.f32 1.0, %v820_v21  ;;  %v2352_v41 = vadd.f32 1.0, %v821_v47  ;;  %v2924_v53 = vld [vmem:[#allocation29_spill] sm:$0xff] }
 0x111   : > { %v843_v40 = vmax.f32 %v825_v61, 0.0  ;;  %v2354_v4 = vadd.f32 1.0, %v822_v2  ;;  %v844_v62 = vmax.f32 %v826_v51, 0.0  ;;  %v845_v46 = vmax.f32 %v827_v55, 0.0  ;;  %v2926_v61 = vld [vmem:[#allocation14_spill] sm:$0xff] }
 0x112   : > { %v846_v58 = vmax.f32 %v828_v36, 0.0  ;;  %v847_v26 = vmax.f32 %v829_v37, 0.0  ;;  %v848_v20 = vmax.f32 %v830_v17, 0.0  ;;  %v2912_v13 = vmax.f32 %v2170_v25, 0.0  ;;  %v2928_v37 = vld [vmem:[#allocation30_spill] sm:$0xff] }
 0x113   : > { %v2914_v33 = vrot.slane %v2913_v35, %v2877_v16  ;;  %v849_v29 = vmax.f32 %v831_v12, 0.0  ;;  %v850_v57 = vmax.f32 %v832_v14, 0.0  ;;  %v2915_v6 = vmax.f32 %v2172_v44, 0.0  ;;  %v2930_v14 = vld [vmem:[#allocation15_spill] sm:$0xff] }
 0x114   : > { %v2358_v28 = vmul.f32 %v841_v38, %v2912_v13  ;;  %v2916_v18 = vrot.slane %v2913_v35, %v1746_v22  ;;  %v851_v15 = vmax.f32 %v833_v19, 0.0  ;;  %v852_v25 = vmax.f32 %v834_v63, 0.0  ;;  %v2938_v13 = vld [vmem:[#allocation23_spill] sm:$0xff] }
 0x115   : > { %v974_v21 = vadd.f32 %v2344_v11, %v2914_v33  ;;  %v2366_v32 = vmul.f32 %v842_v39, %v2915_v6  ;;  %v2917_v30 = vmax.f32 %v2174_v49, 0.0  ;;  %v2918_v27 = vrot.slane %v2913_v35, %v1748_v23 }
 0x116   : > { %v975_v43 = vadd.f32 %v2344_v11, %v2916_v18  ;;  %v853_v1 = vmax.f32 %v835_v48, 0.0  ;;  %v854_v44 = vmax.f32 %v2346_v3, 0.0  ;;  %v2919_v56 = vmax.f32 %v2176_v45, 0.0  ;;  %v2932_v3 = vld [vmem:[#allocation31_spill] sm:$0xff] }
 0x117   : > { %v2374_v0 = vmul.f32 %v843_v40, %v2917_v30  ;;  %v976_v60 = vadd.f32 %v2344_v11, %v2918_v27  ;;  %v2920_v34 = vrot.slane %v2913_v35, %v1758_v31  ;;  %v855_v49 = vmax.f32 %v2348_v7, 0.0  ;;  %v2943_v30 = vld [vmem:[#allocation34_spill] sm:$0xff] }
 0x118   : > { %v2383_v54 = vmul.f32 %v844_v62, %v2919_v56  ;;  %v2921_v5 = vmax.f32 %v2178_v9, 0.0  ;;  %v2923_v59 = vrot.slane %v2913_v35, %v2922_v52  ;;  %v992_v45 = vsub.f32 %v974_v21, %v2358_v28 }
 0x119   : > { %v977_v50 = vadd.f32 %v2344_v11, %v2920_v34  ;;  %v856_v24 = vmax.f32 %v2350_v42, 0.0  ;;  %v2925_v47 = vmax.f32 %v2924_v53, 0.0  ;;  %v2927_v51 = vrot.slane %v2913_v35, %v2926_v61  ;;  %v2934_v42 = vld [vmem:[#allocation16_spill] sm:$0xff] }
 0x11a   : > { %v2392_v8 = vmul.f32 %v845_v46, %v2921_v5  ;;  %v978_v10 = vadd.f32 %v2344_v11, %v2923_v59  ;;  %v993_v55 = vsub.f32 %v975_v43, %v2366_v32  ;;  %v857_v36 = vmax.f32 %v2352_v41, 0.0  ;;  %v2936_v46 = vld [vmem:[#allocation32_spill] sm:$0xff] }
 0x11b   : > { %v2402_v2 = vmul.f32 %v846_v58, %v2925_v47  ;;  %v979_v9 = vadd.f32 %v2344_v11, %v2927_v51  ;;  %v2929_v17 = vmax.f32 %v2928_v37, 0.0  ;;  %v2931_v19 = vrot.slane %v2913_v35, %v2930_v14  ;;  %v2949_v53 = vld [vmem:[#allocation36_spill] sm:$0xff]  ;;  %v2952_v37 = vld [vmem:[#allocation17_spill] sm:$0xff] }
 0x11c   : > { %v994_v63 = vsub.f32 %v976_v60, %v2374_v0  ;;  %v858_v48 = vmax.f32 %v2354_v4, 0.0  ;;  %v2933_v39 = vmax.f32 %v2932_v3, 0.0  ;;  %v2935_v41 = vrot.slane %v2913_v35, %v2934_v42 }
 0x11d   : > { %v2412_v12 = vmul.f32 %v847_v26, %v2929_v17  ;;  %v980_v38 = vadd.f32 %v2344_v11, %v2931_v19  ;;  %v995_v62 = vsub.f32 %v977_v50, %v2383_v54  ;;  %v2937_v58 = vmax.f32 %v2936_v46, 0.0  ;;  %v2946_v50 = vld [vmem:[#allocation35_spill] sm:$0xff]  ;;  %v2962_v46 = vld [vmem:[#allocation38_spill] sm:$0xff] }
 0x11e   : > { %v2422_v7 = vmul.f32 %v848_v20, %v2933_v39  ;;  %v981_v40 = vadd.f32 %v2344_v11, %v2935_v41  ;;  %v2939_v33 = vrot.slane %v2938_v13, %v2877_v16  ;;  %v996_v21 = vsub.f32 %v978_v10, %v2392_v8  ;;  %v2940_v20 = vld [vmem:[#allocation33_spill] sm:$0xff] }
 0x11f   : > { %v2431_v26 = vmul.f32 %v849_v29, %v2937_v58  ;;  %1397 = vrcp.f32 %v992_v45  ;;  %v2941_v6 = vmax.f32 %v2940_v20, 0.0  ;;  %v2942_v35 = vrot.slane %v2938_v13, %v1746_v22 }
 0x120   : > { %v982_v4 = vadd.f32 %v2344_v11, %v2939_v33  ;;  %v997_v29 = vsub.f32 %v979_v9, %v2402_v2  ;;  %1399 = vrcp.f32 %v993_v55  ;;  %v2944_v27 = vmax.f32 %v2943_v30, 0.0 }
 0x121   : > { %v2440_v18 = vmul.f32 %v850_v57, %v2941_v6  ;;  %v983_v43 = vadd.f32 %v2344_v11, %v2942_v35  ;;  %v2945_v56 = vrot.slane %v2938_v13, %v1748_v23  ;;  %v998_v57 = vsub.f32 %v980_v38, %v2412_v12  ;;  %v2956_v38 = vld [vmem:[#allocation37_spill] sm:$0xff]  ;;  %v2513_v35 = vpop.permute.xlu0 %1048 }
 0x122   : > { %v2449_v60 = vmul.f32 %v851_v15, %v2944_v27  ;;  %1401 = vrcp.f32 %v994_v63  ;;  %v2947_v5 = vmax.f32 %v2946_v50, 0.0  ;;  %v2948_v10 = vrot.slane %v2938_v13, %v1758_v31 }
 0x123   : > { %v984_v34 = vadd.f32 %v2344_v11, %v2945_v56  ;;  %v999_v15 = vsub.f32 %v981_v40, %v2422_v7  ;;  %1403 = vrcp.f32 %v995_v62  ;;  %v2950_v47 = vmax.f32 %v2949_v53, 0.0 }
 0x124   : > { %v2458_v59 = vmul.f32 %v852_v25, %v2947_v5  ;;  %v985_v45 = vadd.f32 %v2344_v11, %v2948_v10  ;;  %v2951_v9 = vrot.slane %v2938_v13, %v2922_v52  ;;  %v1000_v25 = vsub.f32 %v982_v4, %v2431_v26 }
 0x125   : > { %v2467_v51 = vmul.f32 %v853_v1, %v2950_v47  ;;  %1405 = vrcp.f32 %v996_v21  ;;  %v2953_v17 = vrot.slane %v2952_v37, %v2877_v16  ;;  %v2957_v63 = vmax.f32 %v2956_v38, 0.0  ;;  %v2984_v38 = vld [vmem:[#allocation41_spill] sm:$0xff] }
 0x126   : > { %v986_v55 = vadd.f32 %v2344_v11, %v2951_v9  ;;  %v2958_v1 = vrot.slane %v2938_v13, %v2926_v61  ;;  %v1001_v41 = vsub.f32 %v983_v43, %v2440_v18  ;;  %1407 = vrcp.f32 %v997_v29  ;;  %v2968_v43 = vld [vmem:[#allocation39_spill] sm:$0xff] }
 0x127   : > { %vm2477_vm0 = vcmp.eq.s32.totalorder %v2953_v17, 1  ;;  %v2483_v3 = vmul.f32 %v854_v44, %v2957_v63  ;;  %v2959_v40 = vrot.slane %v2952_v37, %v1746_v22  ;;  %v2963_v58 = vmax.f32 %v2962_v46, 0.0 }
 0x128   : > { %v987_v39 = vadd.f32 %v2344_v11, %v2958_v1  ;;  %v2964_v44 = vrot.slane %v2938_v13, %v2930_v14  ;;  %v1002_v21 = vsub.f32 %v984_v34, %v2449_v60  ;;  %1409 = vrcp.f32 %v998_v57 }
 0x129   : > { %vm2493_vm1 = vcmp.eq.s32.totalorder %v2959_v40, 1  ;;  %v2499_v33 = vmul.f32 %v855_v49, %v2963_v58  ;;  %v2965_v20 = vrot.slane %v2952_v37, %v1748_v23  ;;  %v2969_v49 = vmax.f32 %v2968_v43, 0.0  ;;  %v1398_v58 = vpop.eup %1397  ;;  %v2993_v43 = vld [vmem:[#allocation18_spill] sm:$0xff] }
 0x12a   : > { %v988_v4 = vadd.f32 %v2344_v11, %v2964_v44  ;;  %v2970_v30 = vrot.slane %v2938_v13, %v2934_v42  ;;  %v1003_v56 = vsub.f32 %v985_v45, %v2458_v59  ;;  %1411 = vrcp.f32 %v999_v15  ;;  %v2977_v13 = vld [vmem:[#allocation40_spill] sm:$0xff]  ;;  %v2979_v45 = vld [vmem:[#allocation25_spill] sm:$0xff] }
 0x12b   : > { %vm2509_vm2 = vcmp.eq.s32.totalorder %v2965_v20, 1  ;;  %v2517_v29 = vmul.f32 %v856_v24, %v2969_v49  ;;  %v2971_v34 = vrot.slane %v2952_v37, %v1758_v31  ;;  %v2974_v50 = vrot.slane %v2952_v37, %v2922_v52 }
 0x12c   : > { %v989_v27 = vadd.f32 %v2344_v11, %v2970_v30  ;;  %v2978_v5 = vmax.f32 %v2977_v13, 0.0  ;;  %v2980_v15 = vrot.slane %v2979_v45, %v2877_v16  ;;  %v1004_v47 = vsub.f32 %v986_v55, %v2467_v51 }
 0x12d   : > { %vm2527_vm3 = vcmp.eq.s32.totalorder %v2971_v34, 1  ;;  %vm2534_vm4 = vcmp.eq.s32.totalorder %v2974_v50, 1  ;;  %1413 = vrcp.f32 %v1000_v25  ;;  %v2981_v9 = vrot.slane %v2952_v37, %v2926_v61 }
 0x12e   : > { %v2540_v10 = vmul.f32 %v857_v36, %v2978_v5  ;;  %v990_v53 = vadd.f32 %v2344_v11, %v2980_v15  ;;  %v2985_v63 = vmax.f32 %v2984_v38, 0.0  ;;  %v2986_v36 = vrot.slane %v2979_v45, %v1746_v22 }
 0x12f   : > { %vm2550_vm5 = vcmp.eq.s32.totalorder %v2981_v9, 1  ;;  %v1005_v46 = vsub.f32 %v987_v39, %v2483_v3  ;;  %1415 = vrcp.f32 %v1001_v41  ;;  %v2987_v55 = vrot.slane %v2952_v37, %v2930_v14  ;;  %v1400_v39 = vpop.eup %1399 }
 0x130   : > { %v2556_v1 = vmul.f32 %v858_v48, %v2985_v63  ;;  %v991_v40 = vadd.f32 %v2344_v11, %v2986_v36  ;;  %vm1050_vm7 = vcmp.eq.s32.totalorder %v2513_v35, 1  ;;  %v1006_v48 = vsub.f32 %v988_v4, %v2499_v33  ;;  %v1402_v4 = vpop.eup %1401 }
 0x131   : > { %vm2566_vm6 = vcmp.eq.s32.totalorder %v2987_v55, 1  ;;  %1417 = vrcp.f32 %v1002_v21  ;;  %v2990_v44 = vrot.slane %v2952_v37, %v2934_v42  ;;  %v1007_v41 = vsub.f32 %v989_v27, %v2517_v29 }
 0x132   : > { %v1011_v20 = vmul.f32 %v1398_v58, %v2358_v28  ;;  %1419 = vrcp.f32 %v1003_v56  ;;  %v2994_v49 = vrot.slane %v2993_v43, %v2877_v16  ;;  %v1008_v37 = vsub.f32 %v990_v53, %v2540_v10  ;;  %v1404_v28 = vpop.eup %1403 }
 0x133   : > { %vm2575_vm8 = vcmp.eq.s32.totalorder %v2990_v44, 1  ;;  %v1013_v21 = vmul.f32 %v1400_v39, %v2366_v32  ;;  %1421 = vrcp.f32 %v1004_v47  ;;  %v2997_v34 = vrot.slane %v2993_v43, %v1746_v22  ;;  %v1406_v45 = vpop.eup %1405 }
 0x134   : > { %vm2584_vm9 = vcmp.eq.s32.totalorder %v2994_v49, 1  ;;  %v1009_v56 = vsub.f32 %v991_v40, %v2556_v1  ;;  %v1015_v50 = vmul.f32 %v1402_v4, %v2374_v0  ;;  %1423 = vrcp.f32 %v1005_v46  ;;  %v1408_v9 = vpop.eup %1407 }
 0x135   : > { %vm2593_vm10 = vcmp.eq.s32.totalorder %v2997_v34, 1  ;;  %v1051_v13 = vsel %vm1050_vm7, 0.0, %v1011_v20  ;;  %v3000_v32 = vrot.slane %v2993_v43, %v1748_v23  ;;  %v1017_v15 = vmul.f32 %v1404_v28, %v2383_v54  ;;  %v1410_v36 = vpop.eup %1409 }
 0x136   : > { %1425 = vrcp.f32 %v1006_v48  ;;  %v1052_v53 = vsel %vm1050_vm7, 0.0, %v1013_v21  ;;  %v3003_v0 = vrot.slane %v2993_v43, %v1758_v31  ;;  %v1019_v23 = vmul.f32 %v1406_v45, %v2392_v8  ;;  %v1412_v58 = vpop.eup %1411 }
 0x137   : > { %vm2604_vm11 = vcmp.eq.s32.totalorder %v3000_v32, 1  ;;  %1427 = vrcp.f32 %v1007_v41  ;;  %v1053_v38 = vsel %vm1050_vm7, 0.0, %v1015_v50  ;;  %v3006_v54 = vrot.slane %v2993_v43, %v2922_v52  ;;  %v1414_v44 = vpop.eup %1413 }
 0x138   : > { %vm2614_vm12 = vcmp.eq.s32.totalorder %v3003_v0, 1  ;;  %v1162_v31 = vsel %vm2477_vm0, %v1051_v13, -1e+30  ;;  %v1021_v40 = vmul.f32 %v1408_v9, %v2402_v2  ;;  %1429 = vrcp.f32 %v1008_v37  ;;  %v3018_v37 = vld [vmem:[#allocation26_spill] sm:$0xff] }
 0x139   : > { %vm2624_vm13 = vcmp.eq.s32.totalorder %v3006_v54, 1  ;;  %v1054_v8 = vsel %vm1050_vm7, 0.0, %v1017_v15  ;;  %v3009_v46 = vrot.slane %v2993_v43, %v2926_v61  ;;  %v1163_v52 = vsel %vm2493_vm1, %v1052_v53, -1e+30  ;;  %v1416_v49 = vpop.eup %1415 }
 0x13a   : > { %v1023_v19 = vmul.f32 %v1410_v36, %v2412_v12  ;;  %1431 = vrcp.f32 %v1009_v56  ;;  %v1055_v2 = vsel %vm1050_vm7, 0.0, %v1019_v23  ;;  %v1164_v48 = vsel %vm2509_vm2, %v1053_v38, -1e+30 }
 0x13b   : > { %vm2636_vm14 = vcmp.eq.s32.totalorder %v3009_v46, 1  ;;  %v1025_v61 = vmul.f32 %v1412_v58, %v2422_v7  ;;  %v1056_v39 = vsel %vm1050_vm7, 0.0, %v1021_v40  ;;  %v3012_v62 = vrot.slane %v2993_v43, %v2930_v14  ;;  %v1418_v34 = vpop.eup %1417 }
 0x13c   : > { %v3015_v12 = vrot.slane %v2993_v43, %v2934_v42  ;;  %v1165_v7 = vsel %vm2527_vm3, %v1054_v8, -1e+30  ;;  %v1166_v6 = vsel %vm2534_vm4, %v1055_v2, -1e+30  ;;  %v1027_v14 = vmul.f32 %v1414_v44, %v2431_v26  ;;  %v1420_v50 = vpop.eup %1419 }
 0x13d   : > { %vm2653_vm15 = vcmp.eq.s32.totalorder %v3012_v62, 1  ;;  %v1057_v4 = vsel %vm1050_vm7, 0.0, %v1023_v19  ;;  %v3019_v21 = vrot.slane %v3018_v37, %v2877_v16  ;;  %v1167_v57 = vsel %vm2550_vm5, %v1056_v39, -1e+30  ;;  %v1422_v45 = vpop.eup %1421 }
 0x13e   : > { %vm2660_vm0 = vcmp.eq.s32.totalorder %v3015_v12, 1  ;;  %v1180_v43 = vmax.f32 %v1162_v31, %v1166_v6  ;;  %v1029_v24 = vmul.f32 %v1416_v49, %v2440_v18  ;;  %v1058_v26 = vsel %vm1050_vm7, 0.0, %v1025_v61  ;;  %v1424_v0 = vpop.eup %1423 }
 0x13f   : > { %vm2674_vm1 = vcmp.eq.s32.totalorder %v3019_v21, 1  ;;  %v1168_v28 = vsel %vm2566_vm6, %v1057_v4, -1e+30  ;;  %v1181_v56 = vmax.f32 %v1163_v52, %v1167_v57  ;;  %v1031_v16 = vmul.f32 %v1418_v34, %v2449_v60 }
 0x140   : > { %v1059_v13 = vsel %vm1050_vm7, 0.0, %v1027_v14  ;;  %v1169_v17 = vsel %vm2575_vm8, %v1058_v26, -1e+30  ;;  %v1182_v32 = vmax.f32 %v1164_v48, %v1168_v28  ;;  %v1033_v18 = vmul.f32 %v1420_v50, %v2458_v59  ;;  %v1426_v38 = vpop.eup %1425 }
 0x141   : > { %v1060_v15 = vsel %vm1050_vm7, 0.0, %v1029_v24  ;;  %v1170_v25 = vsel %vm2584_vm9, %v1059_v13, -1e+30  ;;  %v1183_v53 = vmax.f32 %v1165_v7, %v1169_v17  ;;  %v1035_v60 = vmul.f32 %v1422_v45, %v2467_v51  ;;  %v1428_v36 = vpop.eup %1427 }
 0x142   : > { %v1061_v9 = vsel %vm1050_vm7, 0.0, %v1031_v16  ;;  %v1171_v11 = vsel %vm2593_vm10, %v1060_v15, -1e+30  ;;  %v1184_v23 = vmax.f32 %v1180_v43, %v1170_v25  ;;  %v1037_v59 = vmul.f32 %v1424_v0, %v2483_v3  ;;  %v1430_v46 = vpop.eup %1429 }
 0x143   : > { %v1062_v54 = vsel %vm1050_vm7, 0.0, %v1033_v18  ;;  %v1172_v30 = vsel %vm2604_vm11, %v1061_v9, -1e+30  ;;  %v1185_v31 = vmax.f32 %v1181_v56, %v1171_v11  ;;  %v1039_v51 = vmul.f32 %v1426_v38, %v2499_v33 }
 0x144   : > { %v1063_v40 = vsel %vm1050_vm7, 0.0, %v1035_v60  ;;  %v1173_v27 = vsel %vm2614_vm12, %v1062_v54, -1e+30  ;;  %v1186_v8 = vmax.f32 %v1182_v32, %v1172_v30  ;;  %v1041_v3 = vmul.f32 %v1428_v36, %v2517_v29  ;;  %v1432_v19 = vpop.eup %1431 }
 0x145   : > { %v1064_v52 = vsel %vm1050_vm7, 0.0, %v1037_v59  ;;  %v1174_v5 = vsel %vm2624_vm13, %v1063_v40, -1e+30  ;;  %v1187_v58 = vmax.f32 %v1183_v53, %v1173_v27  ;;  %v1043_v33 = vmul.f32 %v1430_v46, %v2540_v10 }
 0x146   : > { %v1065_v2 = vsel %vm1050_vm7, 0.0, %v1039_v51  ;;  %v1175_v47 = vsel %vm2636_vm14, %v1064_v52, -1e+30  ;;  %v1188_v48 = vmax.f32 %v1184_v23, %v1174_v5  ;;  %v1045_v44 = vmul.f32 %v1432_v19, %v2556_v1 }
 0x147   : > { %v1066_v29 = vsel %vm1050_vm7, 0.0, %v1041_v3  ;;  %v3022_v63 = vrot.slane %v3018_v37, %v1746_v22  ;;  %v1189_v61 = vmax.f32 %v1185_v31, %v1175_v47  ;;  %v1067_v10 = vsel %vm1050_vm7, 0.0, %v1043_v33 }
 0x148   : > { %v1176_v55 = vsel %vm2653_vm15, %v1065_v2, -1e+30  ;;  %v1177_v39 = vsel %vm2660_vm0, %v1066_v29, -1e+30  ;;  %v1068_v1 = vsel %vm1050_vm7, 0.0, %v1045_v44  ;;  %vm1199_vm3 = vcmask 7168  }
 0x149   : > { %vm1161_vm2 = vcmp.eq.s32.totalorder %v3022_v63, 1  ;;  %v1178_v62 = vsel %vm2674_vm1, %v1067_v10, -1e+30  ;;  %v1190_v22 = vmax.f32 %v1186_v8, %v1176_v55  ;;  %v1191_v12 = vmax.f32 %v1187_v58, %v1177_v39 }
 0x14a   : > { %v1179_v7 = vsel %vm1161_vm2, %v1068_v1, -1e+30  ;;  %v1192_v6 = vmax.f32 %v1188_v48, %v1178_v62 }
 0x14b   : > { %v1193_v49 = vmax.f32 %v1189_v61, %v1179_v7  ;;  %v1195_v4 = vmax.f32 %v1190_v22, %v1191_v12 }
 0x14d   : > { %v1194_v14 = vmax.f32 %v1192_v6, %v1193_v49 }
 0x14f   : > { %v1196_v37 = vmax.f32 %v1194_v14, %v1195_v4 }
 0x151   : > { %1197 = vmax.xlane.f32.xlu1 %v1196_v37 }
 0x1de   : > { %v1198_v35 = vpop.xlane.xlu1 %1197 }
 0x1df   : > { %1200 = vst.msk [vmem:[%s207_s13] sm:$0xff] %vm1199_vm3, %v1198_v35 }
 0x1e0 PF: > { %s21_s27 = sadd.s32 1, %s1557_s27   ;;  %s3023_s22 = smov %s1541_s23 }
 0x1e1   : > { %p18_p12 = scmp.ge.s32.totalorder %s21_s27, 4   ;;  %s3024_s23 = smov %s1545_s24 }
 0x1e2   : > { %s3025_s24 = smov %s1691_s0  ;;  %s3026_s25 = smov %s1553_s26 }
 0x1e3   : > { %s3027_s26 = smov %s3029_s7  ;;  %20 = sbr.rel (!%p18_p12) target bundleno = 17 (0x11), region = 91 }
 0x1ea   :  { %1228 = vsyncpa [#allocation5], 1 }
 0x1eb   :  { %1230 = vsyncpa [#allocation5 + $0x1], 1 }
 0x1ec   :  { %1231 = vsyncpa [#allocation7], 1 }
 0x1ed   :  { %1233 = vsyncpa [#allocation7 + $0x1], 1 }

</bundles_post_ra>
